<compile_context>
chip_gen: v7x
topology: tpu7x:2x2x1
jax: 0.10.0
libtpu: 0.0.40
codegen_flags: <defaults>
</compile_context>

<pallas_src>
import math

import jax
import jax.numpy as jnp
from jax.experimental import pallas as pl
from jax.experimental.pallas import tpu as pltpu


def _ceil_div(a, b):
    return -(-a // b)


def _round_up(a, b):
    return _ceil_div(a, b) * b


def _pool_out_size(in_size, k, s, d):
    """PyTorch MaxPool2d output size for padding=0, ceil_mode=True."""
    eff = d * (k - 1) + 1
    out = _ceil_div(in_size - eff, s) + 1
    # ceil_mode: the last window must start strictly inside the input.
    if (out - 1) * s >= in_size:
        out -= 1
    return out


def _make_pool_kernel(kh, kw, sh, sw, dh, dw, H, W, h_out, w_out,
                      hpad, hp_need, w_need, neg_val):
    """Kernel pooling one (TNC, H, W) channel block -> (TNC, h_out, w_out)."""

    def kernel(x_ref, o_ref, xp_ref):
        tnc = x_ref.shape[0]
        dt = x_ref.dtype

        # Build the padded plane entirely in VMEM.  Pad regions are rewritten
        # every grid step (cheap masked VMEM stores), so correctness does not
        # depend on how the parallel grid axis is sharded across TensorCores.
        if dh > 0:
            zeros = jnp.zeros((tnc, dh, W), dt)
            xp_ref[:, 0:dh, 0:W] = zeros                 # top zero pad
            xp_ref[:, H + dh:hpad, 0:W] = zeros          # bottom zero pad
        if hp_need > hpad:                               # ceil-mode tail rows
            xp_ref[:, hpad:hp_need, 0:W] = jnp.full(
                (tnc, hp_need - hpad, W), neg_val, dt)
        if w_need > W:                                   # ceil-mode tail cols
            xp_ref[:, :, W:w_need] = jnp.full(
                (tnc, hp_need, w_need - W), neg_val, dt)
        xp_ref[:, dh:dh + H, 0:W] = x_ref[...]           # real data

        xp = xp_ref[...]
        acc = None
        # Unrolled kh*kw window: max over shifted (strided) slices.  H slices
        # hit the sublane axis; W slices are the identity when kw == 1.
        for a in range(kh):
            for b in range(kw):
                sub = xp[:, a * dh: a * dh + sh * (h_out - 1) + 1: sh,
                            b * dw: b * dw + sw * (w_out - 1) + 1: sw]
                acc = sub if acc is None else jnp.maximum(acc, sub)
        o_ref[...] = acc

    return kernel


def dilated_maxpool2d(x, kernel_size, stride, dilation):
    """Matches DilatedMaxPool2d.forward for NCHW inputs (dtype preserving)."""
    kh, kw = kernel_size
    sh, sw = stride
    dh, dw = dilation
    n, c, h, w = x.shape
    dt = x.dtype
    itemsize = jnp.dtype(dt).itemsize

    hpad = h + 2 * dh                       # the module's explicit zero pad
    h_out = _pool_out_size(hpad, kh, sh, dh)
    w_out = _pool_out_size(w, kw, sw, dw)
    assert h_out >= 1 and w_out >= 1

    eff_h = dh * (kh - 1) + 1
    eff_w = dw * (kw - 1) + 1
    hp_need = max(hpad, (h_out - 1) * sh + eff_h)   # rows incl. ceil overflow
    w_need = max(w, (w_out - 1) * sw + eff_w)       # cols incl. ceil overflow

    if jnp.issubdtype(dt, jnp.floating):
        neg_val = float("-inf")             # exact "ignored element" semantics
    else:
        neg_val = int(jnp.iinfo(dt).min)

    nc = n * c
    x3 = x.reshape(nc, h, w)                # free: NCHW is already contiguous

    # --- channel-block size from a conservative VMEM budget -----------------
    def vmem_bytes(rows, cols):             # one (8,128)-tiled plane per channel
        return _round_up(rows, 8) * _round_up(cols, 128) * itemsize

    per_ch = (2 * vmem_bytes(h, w)                 # input block, double buffered
              + 2 * vmem_bytes(h_out, w_out)       # output block, double buffered
              + 3 * vmem_bytes(hp_need, w_need))   # scratch + padded value + temps
    budget = 16 * 1024 * 1024
    tnc = max(1, min(nc, budget // max(per_ch, 1)))
    if nc >= 2:
        # keep the parallel grid at >= 2 steps so both v7x TensorCores get work
        tnc = min(tnc, _ceil_div(nc, 2))
    # TODO(synk): halo-tile H for planes so large that even a single (1, H, W)
    # block overflows VMEM; current tiling is channel-only.
    grid = (pl.cdiv(nc, tnc),)

    kernel = _make_pool_kernel(kh, kw, sh, sw, dh, dw, h, w, h_out, w_out,
                               hpad, hp_need, w_need, neg_val)
    out_bytes = nc * h_out * w_out * itemsize

    out3 = pl.pallas_call(
        kernel,
        out_shape=jax.ShapeDtypeStruct((nc, h_out, w_out), dt),
        grid=grid,
        in_specs=[pl.BlockSpec((tnc, h, w), lambda i: (i, 0, 0))],
        out_specs=pl.BlockSpec((tnc, h_out, w_out), lambda i: (i, 0, 0)),
        scratch_shapes=[pltpu.VMEM((tnc, hp_need, w_need), dt)],
        compiler_params=pltpu.CompilerParams(
            dimension_semantics=("parallel",),
            vmem_limit_bytes=32 * 1024 * 1024),
        cost_estimate=pl.CostEstimate(
            flops=nc * h_out * w_out * kh * kw,
            transcendentals=0,
            bytes_accessed=x.size * itemsize + out_bytes),
    )(x3)
    return out3.reshape(n, c, h_out, w_out)


if __name__ == "__main__":
    import numpy as np

    # Module config: kernel over time with dilation so the time dim is kept.
    kernel_size, stride, dilation = (3, 1), (1, 1), (2, 1)

    key = jax.random.PRNGKey(0)
    x = jax.random.normal(key, (2, 4, 16, 16), dtype=jnp.float32)

    out = dilated_maxpool2d(x, kernel_size, stride, dilation)
    out = jax.block_until_ready(out)

    # Pure-numpy reference mirroring the exact torch semantics.
    xn = np.asarray(x)
    kh, kw = kernel_size
    sh, sw = stride
    dh, dw = dilation
    n, c, h, w = xn.shape
    pad = np.zeros((n, c, h + 2 * dh, w), np.float32)
    pad[:, :, dh:h + dh, :] = xn
    hp = h + 2 * dh
    h_out = _pool_out_size(hp, kh, sh, dh)
    w_out = _pool_out_size(w, kw, sw, dw)
    ref = np.full((n, c, h_out, w_out), -np.inf, np.float32)
    for i in range(h_out):
        for j in range(w_out):
            for a in range(kh):
                for b in range(kw):
                    hi, wj = i * sh + a * dh, j * sw + b * dw
                    if hi < hp and wj < w:
                        ref[:, :, i, j] = np.maximum(ref[:, :, i, j],
                                                     pad[:, :, hi, wj])

    assert out.shape == ref.shape, (out.shape, ref.shape)
    assert out.dtype == x.dtype, (out.dtype, x.dtype)
    np.testing.assert_allclose(np.asarray(out), ref, rtol=0, atol=0)
    print("KERNEL_OK")
</pallas_src>

<mosaic_0001>
module attributes {stable_mosaic.version = 11 : i64} {
  func.func @kernel(%arg0: i32, %arg1: memref<4x16x16xf32, #tpu.memory_space<vmem>>, %arg2: memref<4x16x16xf32, #tpu.memory_space<vmem>>, %arg3: memref<4x20x16xf32, #tpu.memory_space<vmem>>) attributes {dimension_semantics = [#tpu.dimension_semantics<parallel>], iteration_bounds = array<i64: 2>, scalar_prefetch = 0 : i64, scratch_operands = 1 : i64, tpu.core_type = #tpu.core_type<tc>, window_params = [{transform_indices = @transform_0, window_bounds = array<i64: 4, 16, 16>}, {transform_indices = @transform_1, window_bounds = array<i64: 4, 16, 16>}]} {
    %cst = arith.constant 0.000000e+00 : f32
    %0 = vector.broadcast %cst : f32 to vector<4x2x16xf32>
    %c0 = arith.constant 0 : index
    %c0_0 = arith.constant 0 : index
    %c0_1 = arith.constant 0 : index
    %1 = vector.load %arg3[%c0, %c0_0, %c0_1] : memref<4x20x16xf32, #tpu.memory_space<vmem>>, vector<4x2x16xf32>
    tpu.vector_store %arg3[%c0, %c0_0, %c0_1], %0 {strides = array<i32>} : memref<4x20x16xf32, #tpu.memory_space<vmem>>, vector<4x2x16xf32>,
    %c0_2 = arith.constant 0 : index
    %c18 = arith.constant 18 : index
    %c0_3 = arith.constant 0 : index
    %2 = vector.load %arg3[%c0_2, %c18, %c0_3] : memref<4x20x16xf32, #tpu.memory_space<vmem>>, vector<4x2x16xf32>
    tpu.vector_store %arg3[%c0_2, %c18, %c0_3], %0 {strides = array<i32>} : memref<4x20x16xf32, #tpu.memory_space<vmem>>, vector<4x2x16xf32>,
    %c0_4 = arith.constant 0 : index
    %c0_5 = arith.constant 0 : index
    %c0_6 = arith.constant 0 : index
    %3 = vector.load %arg1[%c0_4, %c0_5, %c0_6] : memref<4x16x16xf32, #tpu.memory_space<vmem>>, vector<4x16x16xf32>
    %c0_7 = arith.constant 0 : index
    %c2 = arith.constant 2 : index
    %c0_8 = arith.constant 0 : index
    %4 = vector.load %arg3[%c0_7, %c2, %c0_8] : memref<4x20x16xf32, #tpu.memory_space<vmem>>, vector<4x16x16xf32>
    tpu.vector_store %arg3[%c0_7, %c2, %c0_8], %3 {strides = array<i32>} : memref<4x20x16xf32, #tpu.memory_space<vmem>>, vector<4x16x16xf32>,
    %c0_9 = arith.constant 0 : index
    %c0_10 = arith.constant 0 : index
    %c0_11 = arith.constant 0 : index
    %5 = vector.load %arg3[%c0_9, %c0_10, %c0_11] : memref<4x20x16xf32, #tpu.memory_space<vmem>>, vector<4x20x16xf32>
    %6 = vector.extract_strided_slice %5 {offsets = [0, 0, 0], sizes = [4, 16, 16], strides = [1, 1, 1]} : vector<4x20x16xf32> to vector<4x16x16xf32>
    %7 = vector.extract_strided_slice %5 {offsets = [0, 2, 0], sizes = [4, 16, 16], strides = [1, 1, 1]} : vector<4x20x16xf32> to vector<4x16x16xf32>
    %8 = arith.maximumf %6, %7 : vector<4x16x16xf32>
    %9 = vector.extract_strided_slice %5 {offsets = [0, 4, 0], sizes = [4, 16, 16], strides = [1, 1, 1]} : vector<4x20x16xf32> to vector<4x16x16xf32>
    %10 = arith.maximumf %8, %9 : vector<4x16x16xf32>
    %c0_12 = arith.constant 0 : index
    %c0_13 = arith.constant 0 : index
    %c0_14 = arith.constant 0 : index
    %11 = vector.load %arg2[%c0_12, %c0_13, %c0_14] : memref<4x16x16xf32, #tpu.memory_space<vmem>>, vector<4x16x16xf32>
    tpu.vector_store %arg2[%c0_12, %c0_13, %c0_14], %10 {strides = array<i32>} : memref<4x16x16xf32, #tpu.memory_space<vmem>>, vector<4x16x16xf32>,
    return
  }
  func.func @transform_0(%arg0: i32) -> (i32, i32, i32) {
    %c0_i32 = arith.constant 0 : i32
    %c0_i32_0 = arith.constant 0 : i32
    %c0_i32_1 = arith.constant 0 : i32
    return %arg0, %c0_i32, %c0_i32_0 : i32, i32, i32
  }
  func.func @transform_1(%arg0: i32) -> (i32, i32, i32) {
    %c0_i32 = arith.constant 0 : i32
    %c0_i32_0 = arith.constant 0 : i32
    %c0_i32_1 = arith.constant 0 : i32
    return %arg0, %c0_i32, %c0_i32_0 : i32, i32, i32
  }
}

</mosaic_0001>

<bundles_post_ra>
// kernel: tpu_custom_call.1
= control target key start
LH: loop header
LB: loop body
LE: loop exit
PB: predicated region body
PF: predicated region fallthrough
CT: control target
= control target key end

     0   :  { %6 = vsyncpa [#allocation4], 0  ;;  %s753_s0 = inlined_call_operand.hbm [shape: f32[8,16,16], index: 0, kind: input, shape index: {}]   ;;  %s754_s1 = inlined_call_operand.hbm [shape: f32[8,16,16], index: 1, kind: output, shape index: {}]  }
   0x1   :  { %8 = vsyncpa [#allocation4 + $0x1], 0 }
   0x2   :  { %9 = vsyncpa [#allocation5], 0 }
   0x3   :  { %11 = vsyncpa [#allocation5 + $0x1], 0  ;;  %s544_s6 = smov 0   ;;  %s546_s7 = smov 0  }
   0x4   :  { %s548_s8 = smov 0   ;;  %s550_s9 = smov 0  }
   0x5 LB: > { %s565_s10 = sadd.s32 4294967295, %s525_s9   ;;  %s358_s11 = sadd.s32 4294967294, %s525_s9   ;;  %s525_s9 = sphi %s550_s9, %s767_s9   ;;  %s521_s8 = sphi %s548_s8, %s766_s8   ;;  %s517_s7 = sphi %s546_s7, %s765_s7   ;;  %s513_s6 = sphi %s544_s6, %s764_s6  }
   0x6   : > { %s569_s12 = sadd.s32 1, %s525_s9   ;;  %s24_s13 = sadd.s32 1, %s521_s8 }
   0x7   : > { %s21_s14 = ssub.s32 %s525_s9, %s569_s12  ;;  %p31_p0 = scmp.ne.s32.totalorder %s521_s8, %s517_s7 }
   0x8   : > { %p22_p1 = scmp.eq.s32.totalorder %s21_s14, 0  ;;  %p32_p2 = scmp.eq.s32.totalorder %s525_s9, 0 }
   0x9   : > { %p37_p3 = scmp.ne.s32.totalorder %s517_s7, %s513_s6  ;;  %p38_p4 = scmp.eq.s32.totalorder %s565_s10, 0 }
   0xa   : > { %s581_s15 = scalar_select %p22_p1, %s521_s8, %s24_s13  }
   0xb   : > { %p583_p5 = por %p32_p2, %p31_p0  ;;  %p587_p6 = por %p38_p4, %p37_p3 }
   0xc   : > { %p61_p7 = scmp.eq.s32.totalorder %s565_s10, 1  ;;  %p67_p8 = scmp.eq.s32.totalorder %s358_s11, 1 }
   0xd   : > { %p390_p10 = scmp.lt.s32.totalorder %s525_s9, 2  ;;  %s87_s20 = sand.u32 1, %s521_s8  }
   0xe   : > { %p594_p11 = por %p61_p7, %p31_p0  ;;  %p598_p12 = por %p67_p8, %p37_p3 }
   0xf   : > { %s375_s21 = sshll.u32 %s525_s9, 10  ;;  %s361_s22 = sshll.u32 %s87_s20, 6 }
  0x10   : > { %s758_s18 = scalar_select %p594_p11, 1, 0 }
  0x11   : > { %s759_s19 = scalar_select %p598_p12, 1, 0 }
  0x12   : > { %s607_s25 = scalar_lea.hbm %s753_s0, %s375_s21  ;;  %s91_s26 = scalar_lea.vmem [#allocation3], %s361_s22 }
  0x13   : > { %s99_s27 = sshll.u32 %s91_s26, 4  ;;  %p611_p13 = pnand %p390_p10, %p583_p5  ;;  %s615_s27 = int_to_ptr.vmem [resolvable:$true] %s99_s27 }
  0x14   : > { %s617_s29 = scalar_lea.sflag [#allocation4], %s87_s20  ;;  %s429_s30 = scalar_lea.hbm %s607_s25, 1024 }
  0x15   : > { %p430_p0 = scmp.ne.s32.totalorder %s607_s25, %s429_s30  ;;  %p431_p1 = pneg %p611_p13 }
  0x16   : > { %s434_s4 = scalar_lea.hbm %s753_s0, 2048  ;;  %p435_p4 = scmp.lt.u32.totalorder %s607_s25, %s753_s0 }
  0x17   : > { %p432_p2 = pnand %p431_p1, %p430_p0  ;;  %p436_p5 = scmp.lt.u32.totalorder %s434_s4, %s429_s30 }
  0x18   : > { %p438_p8 = scmp.lt.u32.totalorder %s429_s30, %s607_s25 }
  0x19   : > { %p433_p3 = pneg %p432_p2  ;;  %p437_p7 = por %p436_p5, %p435_p4 }
  0x1b   : > { %p439_p10 = por %p438_p8, %p437_p7 }
  0x1d   : > { %p440_p9 = pnand %p439_p10, %p433_p3 }
  0x1f   : > { %443 = shalt.err (!%p440_p9)
}
  0x20   : > { %s444_s13 = scalar_lea.vmem %s615_s27, 1024  ;;  %s527_s14 = smov [#allocation3]  }
  0x21   : > { %p445_p0 = scmp.ne.s32.totalorder %s615_s27, %s444_s13  ;;  %s449_s16 = sshll.u32 %s527_s14, 4  ;;  %s450_s16 = int_to_ptr.vmem [resolvable:$false] %s449_s16 }
  0x22   : > { %s451_s20 = scalar_lea.vmem %s450_s16, 2048  ;;  %p452_p11 = scmp.lt.s32.totalorder %s615_s27, %s450_s16 }
  0x23   : > { %p447_p2 = pnand %p445_p0, %p431_p1  ;;  %p453_p4 = scmp.lt.s32.totalorder %s451_s20, %s444_s13 }
  0x25   : > { %p448_p12 = pneg %p447_p2  ;;  %p454_p5 = por %p453_p4, %p452_p11 }
  0x27   : > { %p455_p7 = pnand %p454_p5, %p448_p12 }
  0x29   : > { %458 = shalt.err (!%p455_p7)
}
  0x2a   : > { %s528_s21 = smov 128   ;;  %s529_s22 = smov 8  }
  0x2b   : > { %385 = dma.hbm_to_vmem [thread:$0]  (!%p611_p13), %s607_s25, 1024, %s615_s27, %s617_s29, %s528_s21, %s528_s21, %s529_s22  }
  0x2c   : > { %p365_p9 = scmp.ge.s32.totalorder %s525_s9, 1  ;;  %p107_p1 = scmp.lt.s32.totalorder %s525_s9, 3 }
  0x2e   : > { %p108_p3 = pnand %p365_p9, %p107_p1 }
  0x2f   : > { %s648_s23 = sand.u32 (!%p108_p3), 1, %s517_s7  }
  0x30   : > { %111 = sbr.rel (%p108_p3) target bundleno = 101 (0x65), region = 24  ;;  %s366_s24 = sshll.u32 (!%p108_p3), %s648_s23, 6 }
  0x31   : > { %s114_s26 = scalar_lea.sflag (!%p108_p3), [#allocation4], %s648_s23  ;;  %s117_s30 = scalar_lea.vmem (!%p108_p3), [#allocation3], %s366_s24 }
  0x37   : > { %504 = dma.done.wait (%p587_p6), %s114_s26, 1024  }
  0x38   : > { %506 = vsyncadd (%p587_p6), %s114_s26, 4294966272  ;;  %vm138_vm0 = vcmask 123904   ;;  %v530_v0 = vmov 0.0   ;;  %vm155_vm1 = vcmask 130048   ;;  %v147_v1 = vld [vmem:[%s117_s30] sm:$0xff]  ;;  %v148_v2 = vld [vmem:[%s117_s30 + $0x8] sm:$0xff] }
  0x39   : > { %139 = vst.msk [vmem:[#allocation2] sm:$0x3] %vm138_vm0, %v530_v0  ;;  %140 = vst.msk [vmem:[#allocation2 + $0x18] sm:$0x3] %vm138_vm0, %v530_v0  ;;  %v149_v3 = vld [vmem:[%s117_s30 + $0x10] sm:$0xff]  ;;  %v150_v4 = vld [vmem:[%s117_s30 + $0x18] sm:$0xff] }
  0x3a   : > { %141 = vst.msk [vmem:[#allocation2 + $0x30] sm:$0x3] %vm138_vm0, %v530_v0  ;;  %142 = vst.msk [vmem:[#allocation2 + $0x48] sm:$0x3] %vm138_vm0, %v530_v0  ;;  %v151_v5 = vld [vmem:[%s117_s30 + $0x20] sm:$0xff]  ;;  %v152_v6 = vld [vmem:[%s117_s30 + $0x28] sm:$0xff] }
  0x3b   : > { %143 = vst.msk [vmem:[#allocation2 + $0x12] sm:$0x3] %vm138_vm0, %v530_v0  ;;  %144 = vst.msk [vmem:[#allocation2 + $0x2a] sm:$0x3] %vm138_vm0, %v530_v0  ;;  %v153_v7 = vld [vmem:[%s117_s30 + $0x30] sm:$0xff]  ;;  %v154_v8 = vld [vmem:[%s117_s30 + $0x38] sm:$0xff] }
  0x3c   : > { %145 = vst.msk [vmem:[#allocation2 + $0x42] sm:$0x3] %vm138_vm0, %v530_v0  ;;  %146 = vst.msk [vmem:[#allocation2 + $0x5a] sm:$0x3] %vm138_vm0, %v530_v0  ;;  %vm188_vm2 = vcmask 1045504   ;;  %vm225_vm3 = vcmask 1043456  }
  0x3d   : > { %156 = vst.msk [vmem:[#allocation2 + $0x2] sm:$0xff] %vm155_vm1, %v147_v1  ;;  %157 = vst.msk [vmem:[#allocation2 + $0xa] sm:$0xff] %vm155_vm1, %v148_v2  ;;  %s675_s17 = scalar_lea.vmem [#allocation6], %s366_s24  ;;  %s377_s27 = sshll.u32 %s565_s10, 10 }
  0x3e   : > { %158 = vst.msk [vmem:[#allocation2 + $0x1a] sm:$0xff] %vm155_vm1, %v149_v3  ;;  %159 = vst.msk [vmem:[#allocation2 + $0x22] sm:$0xff] %vm155_vm1, %v150_v4  ;;  %s285_s25 = sshll.u32 %s675_s17, 4  ;;  %s705_s10 = scalar_lea.hbm %s754_s1, %s377_s27  ;;  %s697_s25 = int_to_ptr.vmem [resolvable:$true] %s285_s25 }
  0x3f   : > { %160 = vst.msk [vmem:[#allocation2 + $0x32] sm:$0xff] %vm155_vm1, %v151_v5  ;;  %161 = vst.msk [vmem:[#allocation2 + $0x3a] sm:$0xff] %vm155_vm1, %v152_v6  ;;  %s271_s2 = scalar_lea.sflag [#allocation5], %s648_s23  ;;  %s459_s3 = scalar_lea.vmem %s697_s25, 1024 }
  0x40   : > { %162 = vst.msk [vmem:[#allocation2 + $0x4a] sm:$0xff] %vm155_vm1, %v153_v7  ;;  %163 = vst.msk [vmem:[#allocation2 + $0x52] sm:$0xff] %vm155_vm1, %v154_v8  ;;  %p460_p6 = scmp.ne.s32.totalorder %s697_s25, %s459_s3  ;;  %p761_p11 = scmp.ne.s32.totalorder %s758_s18, 0 }
  0x41   : > { %s531_s4 = smov [#allocation6]  }
  0x42   : > { %p461_p12 = pnand %p460_p6, %p761_p11  ;;  %s463_s5 = sshll.u32 %s531_s4, 4  ;;  %s464_s5 = int_to_ptr.vmem [resolvable:$false] %s463_s5 }
  0x43   : > { %s465_s11 = scalar_lea.vmem %s464_s5, 2048  ;;  %p466_p8 = scmp.lt.s32.totalorder %s697_s25, %s464_s5 }
  0x44   : > { %v164_v9 = vld [vmem:[#allocation2] sm:$0xff]  ;;  %v165_v10 = vld [vmem:[#allocation2 + $0x8] sm:$0xff]  ;;  %v166_v11 = vld [vmem:[#allocation2 + $0x10] sm:$0xf]  ;;  %p462_p13 = pneg %p461_p12  ;;  %p467_p10 = scmp.lt.s32.totalorder %s465_s11, %s459_s3 }
  0x45   : > { %v189_v12 = vrot.slane %v164_v9, 2  ;;  %v190_v13 = vrot.slane %v165_v10, 2  ;;  %v226_v14 = vrot.slane %v164_v9, 4  ;;  %v227_v15 = vrot.slane %v165_v10, 4  ;;  %v167_v16 = vld [vmem:[#allocation2 + $0x18] sm:$0xff]  ;;  %v168_v17 = vld [vmem:[#allocation2 + $0x20] sm:$0xff] }
  0x46   : > { %v192_v18 = vrot.slane %v166_v11, 2  ;;  %v229_v19 = vrot.slane %v166_v11, 4  ;;  %v194_v20 = vrot.slane %v167_v16, 2  ;;  %v195_v21 = vrot.slane %v168_v17, 2  ;;  %v169_v22 = vld [vmem:[#allocation2 + $0x28] sm:$0xf]  ;;  %p468_p0 = por %p467_p10, %p466_p8 }
  0x47   : > { %v191_v23 = vsel %vm188_vm2, %v189_v12, %v190_v13  ;;  %v228_v24 = vsel %vm225_vm3, %v226_v14, %v227_v15  ;;  %v231_v25 = vrot.slane %v167_v16, 4  ;;  %v232_v26 = vrot.slane %v168_v17, 4  ;;  %v170_v27 = vld [vmem:[#allocation2 + $0x30] sm:$0xff]  ;;  %v171_v28 = vld [vmem:[#allocation2 + $0x38] sm:$0xff]  ;;  %v172_v41 = vld [vmem:[#allocation2 + $0x40] sm:$0xf] }
  0x48   : > { %v217_v29 = vmax.f32 %v164_v9, %v191_v23  ;;  %v193_v30 = vsel %vm188_vm2, %v190_v13, %v192_v18  ;;  %v230_v31 = vsel %vm225_vm3, %v227_v15, %v229_v19  ;;  %v196_v32 = vsel %vm188_vm2, %v194_v20, %v195_v21  ;;  %v173_v42 = vld [vmem:[#allocation2 + $0x48] sm:$0xff]  ;;  %v174_v47 = vld [vmem:[#allocation2 + $0x50] sm:$0xff]  ;;  %v175_v56 = vld [vmem:[#allocation2 + $0x58] sm:$0xf]  ;;  %p469_p2 = pnand %p468_p0, %p462_p13 }
  0x49   : > { %v218_v33 = vmax.f32 %v165_v10, %v193_v30  ;;  %v219_v34 = vmax.f32 %v167_v16, %v196_v32  ;;  %v233_v35 = vsel %vm225_vm3, %v231_v25, %v232_v26  ;;  %v197_v36 = vrot.slane %v169_v22, 2 }
  0x4a   : > { %v254_v37 = vmax.f32 %v217_v29, %v228_v24  ;;  %v234_v38 = vrot.slane %v169_v22, 4  ;;  %v199_v39 = vrot.slane %v170_v27, 2  ;;  %v200_v40 = vrot.slane %v171_v28, 2 }
  0x4b   : > { %v255_v43 = vmax.f32 %v218_v33, %v230_v31  ;;  %v256_v44 = vmax.f32 %v219_v34, %v233_v35  ;;  %v198_v45 = vsel %vm188_vm2, %v195_v21, %v197_v36  ;;  %v236_v46 = vrot.slane %v170_v27, 4 }
  0x4c   : > { %262 = vst.msk [vmem:[%s675_s17] sm:$0xff] %vm155_vm1, %v254_v37  ;;  %v220_v48 = vmax.f32 %v168_v17, %v198_v45  ;;  %v235_v49 = vsel %vm225_vm3, %v232_v26, %v234_v38  ;;  %v201_v50 = vsel %vm188_vm2, %v199_v39, %v200_v40  ;;  %v237_v51 = vrot.slane %v171_v28, 4 }
  0x4d   : > { %263 = vst.msk [vmem:[%s675_s17 + $0x8] sm:$0xff] %vm155_vm1, %v255_v43  ;;  %264 = vst.msk [vmem:[%s675_s17 + $0x10] sm:$0xff] %vm155_vm1, %v256_v44  ;;  %v221_v52 = vmax.f32 %v170_v27, %v201_v50  ;;  %v202_v53 = vrot.slane %v172_v41, 2  ;;  %v239_v54 = vrot.slane %v172_v41, 4  ;;  %v204_v55 = vrot.slane %v173_v42, 2 }
  0x4e   : > { %v257_v57 = vmax.f32 %v220_v48, %v235_v49  ;;  %v238_v58 = vsel %vm225_vm3, %v236_v46, %v237_v51  ;;  %v205_v59 = vrot.slane %v174_v47, 2  ;;  %v241_v60 = vrot.slane %v173_v42, 4 }
  0x4f   : > { %v258_v61 = vmax.f32 %v221_v52, %v238_v58  ;;  %v203_v62 = vsel %vm188_vm2, %v200_v40, %v202_v53  ;;  %v242_v63 = vrot.slane %v174_v47, 4  ;;  %v207_v2 = vrot.slane %v175_v56, 2 }
  0x50   : > { %265 = vst.msk [vmem:[%s675_s17 + $0x18] sm:$0xff] %vm155_vm1, %v257_v57  ;;  %v222_v0 = vmax.f32 %v171_v28, %v203_v62  ;;  %v206_v1 = vsel %vm188_vm2, %v204_v55, %v205_v59  ;;  %v244_v3 = vrot.slane %v175_v56, 4  ;;  %v240_v4 = vsel %vm225_vm3, %v237_v51, %v239_v54 }
  0x51   : > { %266 = vst.msk [vmem:[%s675_s17 + $0x20] sm:$0xff] %vm155_vm1, %v258_v61  ;;  %v223_v5 = vmax.f32 %v173_v42, %v206_v1  ;;  %v243_v7 = vsel %vm225_vm3, %v241_v60, %v242_v63  ;;  %v208_v8 = vsel %vm188_vm2, %v205_v59, %v207_v2 }
  0x52   : > { %v259_v6 = vmax.f32 %v222_v0, %v240_v4  ;;  %v224_v10 = vmax.f32 %v174_v47, %v208_v8  ;;  %v245_v11 = vsel %vm225_vm3, %v242_v63, %v244_v3 }
  0x53   : > { %v260_v9 = vmax.f32 %v223_v5, %v243_v7 }
  0x54   : > { %267 = vst.msk [vmem:[%s675_s17 + $0x28] sm:$0xff] %vm155_vm1, %v259_v6  ;;  %v261_v12 = vmax.f32 %v224_v10, %v245_v11 }
  0x55   : > { %268 = vst.msk [vmem:[%s675_s17 + $0x30] sm:$0xff] %vm155_vm1, %v260_v9 }
  0x56   : > { %269 = vst.msk [vmem:[%s675_s17 + $0x38] sm:$0xff] %vm155_vm1, %v261_v12 }
  0x57   : > { %472 = shalt.err (!%p469_p2)
}
  0x58   : > { %s473_s13 = scalar_lea.hbm %s705_s10, 1024  ;;  %s477_s20 = scalar_lea.hbm %s754_s1, 2048 }
  0x59   : > { %p474_p4 = scmp.ne.s32.totalorder %s705_s10, %s473_s13  ;;  %p478_p9 = scmp.lt.u32.totalorder %s705_s10, %s754_s1 }
  0x5a   : > { %p479_p1 = scmp.lt.u32.totalorder %s477_s20, %s473_s13  ;;  %p481_p6 = scmp.lt.u32.totalorder %s473_s13, %s705_s10 }
  0x5b   : > { %p475_p5 = pnand %p474_p4, %p761_p11 }
  0x5c   : > { %p480_p3 = por %p479_p1, %p478_p9 }
  0x5d   : > { %p476_p7 = pneg %p475_p5 }
  0x5e   : > { %p482_p12 = por %p481_p6, %p480_p3 }
  0x60   : > { %p483_p13 = pnand %p482_p12, %p476_p7 }
  0x62   : > { %486 = shalt.err (!%p483_p13)
}
  0x63   : > { %s532_s24 = smov 128   ;;  %s533_s26 = smov 8  }
  0x64   : > { %380 = dma.vmem_to_hbm [thread:$0]  (%p761_p11), %s697_s25, 1024, %s705_s10, %s271_s2, %s532_s24, %s532_s24, %s533_s26  }
  0x65 PF: > { %s300_s30 = sand.u32 1, %s513_s6   ;;  %p762_p8 = scmp.ne.s32.totalorder %s759_s19, 0 }
  0x66   : > { %p763_p10 = scmp.ge.s32.totalorder %s525_s9, 2  ;;  %s301_s17 = scalar_lea.sflag [#allocation5], %s300_s30 }
  0x68   : > { %p387_p0 = pnand %p763_p10, %p762_p8 }
  0x6a   : > { %508 = dma.done.wait (!%p387_p0), %s301_s17, 1024  }
  0x6b   : > { %510 = vsyncadd (!%p387_p0), %s301_s17, 4294966272  ;;  %p14_p2 = scmp.ge.s32.totalorder %s569_s12, 4   ;;  %s764_s6 = smov %s517_s7 }
  0x6c   : > { %s765_s7 = smov %s521_s8  ;;  %s766_s8 = smov %s581_s15 }
  0x6d   : > { %s767_s9 = smov %s569_s12  ;;  %16 = sbr.rel (!%p14_p2) target bundleno = 5 (0x5), region = 69 }
  0x74   :  { %306 = vsyncpa [#allocation4], 1 }
  0x75   :  { %308 = vsyncpa [#allocation4 + $0x1], 1 }
  0x76   :  { %309 = vsyncpa [#allocation5], 1 }
  0x77   :  { %311 = vsyncpa [#allocation5 + $0x1], 1 }

</bundles_post_ra>
